<compile_context>
chip_gen: v5e
topology: v5e:2x2
jax: 0.10.0
libtpu: 0.0.40
codegen_flags: <defaults>
</compile_context>

<pallas_src>
import math

import jax
import jax.numpy as jnp
from jax.experimental import pallas as pl
from jax.experimental.pallas import tpu as pltpu


def _copy_kernel(x_ref, o_ref):
    # Single whole-tile assignment: one vld -> one vst per vreg, no extra ops,
    # no relayout (input and output blocks share the same lane-dense layout).
    o_ref[...] = x_ref[...]


def _largest_tile(dim: int, unit: int, cap: int) -> int:
    """Largest divisor of `dim` that is a multiple of `unit` and <= cap.

    Falls back to the full dim if `dim` is not a multiple of `unit`
    (a full-extent block always satisfies the (8, 128) rule).
    """
    if dim % unit != 0:
        return dim
    best = unit
    t = unit
    limit = min(dim, cap)
    while t <= limit:
        if dim % t == 0:
            best = t
        t += unit
    return best


def reshape_to_3d(x: jax.Array) -> jax.Array:
    """Pallas equivalent of ReshapeTo3D.forward."""
    B, C, L = x.shape
    H = int(math.isqrt(L))
    W = H
    assert H * W == L, "last dim must be a perfect square (matches np.sqrt int cast)"

    # Flatten leading dims: free metadata-only view, keeps the lane dim = L
    # (a multiple of 128 in typical cases) so loads/stores stay lane-dense.
    R = B * C
    x2 = x.reshape(R, L)

    # Tile sizes: rows a multiple of 8 (cap 512), lanes a multiple of 128
    # (cap 2048) -> at most 512*2048*4B = 4 MiB/tile; with double-buffered
    # input + output that is <= 16 MiB, safe on v7x's 64 MiB physical VMEM.
    tile_r = _largest_tile(R, 8, 512)
    tile_l = _largest_tile(L, 128, 2048)
    grid = (R // tile_r, L // tile_l)

    bytes_accessed = 2 * x.size * x.dtype.itemsize  # read + write, mem-bound

    y2 = pl.pallas_call(
        _copy_kernel,
        out_shape=jax.ShapeDtypeStruct((R, L), x.dtype),
        grid=grid,
        in_specs=[pl.BlockSpec((tile_r, tile_l), lambda i, j: (i, j))],
        out_specs=pl.BlockSpec((tile_r, tile_l), lambda i, j: (i, j)),
        compiler_params=pltpu.CompilerParams(
            dimension_semantics=("parallel", "parallel"),
            vmem_limit_bytes=32 * 1024 * 1024,
        ),
        cost_estimate=pl.CostEstimate(
            flops=0, transcendentals=0, bytes_accessed=bytes_accessed
        ),
    )(x2)

    # The 4D reshape is done outside the kernel: metadata-only, no HBM traffic,
    # no lane-sparse (W << 128) output blocks or masked stores.
    return y2.reshape(B, C, H, W)
    # TODO(synk): if this op is standalone (not fused behind a kernel boundary),
    # plain jnp.reshape(x, (B, C, H, W)) is strictly cheaper (zero HBM traffic).


if __name__ == "__main__":
    key = jax.random.PRNGKey(0)
    # Small shape consistent with the module: (batch=2, channels=4, seq=256)
    # -> output (2, 4, 16, 16). L=256 keeps the lane dim a multiple of 128.
    B, C, L = 2, 4, 256
    x = jax.random.normal(key, (B, C, L), dtype=jnp.float32)

    y = reshape_to_3d(x)
    y = jax.block_until_ready(y)

    H = int(math.isqrt(L))
    ref = jnp.reshape(x, (B, C, H, H))
    assert y.shape == (B, C, H, H), y.shape
    assert jnp.array_equal(y, ref), "mismatch vs reference reshape"

    print("KERNEL_OK")
</pallas_src>

<mosaic_0001>
module attributes {stable_mosaic.version = 11 : i64} {
  func.func @_copy_kernel(%arg0: i32, %arg1: i32, %arg2: memref<8x256xf32, #tpu.memory_space<vmem>>, %arg3: memref<8x256xf32, #tpu.memory_space<vmem>>) attributes {dimension_semantics = [#tpu.dimension_semantics<parallel>, #tpu.dimension_semantics<parallel>], iteration_bounds = array<i64: 1, 1>, scalar_prefetch = 0 : i64, scratch_operands = 0 : i64, tpu.core_type = #tpu.core_type<tc>, window_params = [{transform_indices = @transform_0, window_bounds = array<i64: 8, 256>}, {transform_indices = @transform_1, window_bounds = array<i64: 8, 256>}]} {
    %c0 = arith.constant 0 : index
    %c0_0 = arith.constant 0 : index
    %0 = vector.load %arg2[%c0, %c0_0] : memref<8x256xf32, #tpu.memory_space<vmem>>, vector<8x256xf32>
    %c0_1 = arith.constant 0 : index
    %c0_2 = arith.constant 0 : index
    %1 = vector.load %arg3[%c0_1, %c0_2] : memref<8x256xf32, #tpu.memory_space<vmem>>, vector<8x256xf32>
    tpu.vector_store %arg3[%c0_1, %c0_2], %0 {strides = array<i32>} : memref<8x256xf32, #tpu.memory_space<vmem>>, vector<8x256xf32>,
    return
  }
  func.func @transform_0(%arg0: i32, %arg1: i32) -> (i32, i32) {
    %c0_i32 = arith.constant 0 : i32
    return %arg0, %arg1 : i32, i32
  }
  func.func @transform_1(%arg0: i32, %arg1: i32) -> (i32, i32) {
    %c0_i32 = arith.constant 0 : i32
    return %arg0, %arg1 : i32, i32
  }
}

</mosaic_0001>

<bundles_post_ra>
// kernel: tpu_custom_call.1
= control target key start
LH: loop header
LB: loop body
LE: loop exit
PB: predicated region body
PF: predicated region fallthrough
CT: control target
= control target key end

     0   :  { %6 = vsyncpa [#allocation3], 0  ;;  %s116_s0 = inlined_call_operand.hbm [shape: f32[8,256], index: 0, kind: input, shape index: {}]   ;;  %s117_s1 = inlined_call_operand.hbm [shape: f32[8,256], index: 1, kind: output, shape index: {}]  }
   0x1   :  { %7 = vsyncpa [#allocation4], 0  ;;  %s13_s8 = sshll.u32 %s116_s0, 4  ;;  %s98_s9 = smov [#allocation2]   ;;  %s14_s8 = int_to_ptr.hbm [resolvable:$true] %s13_s8 }
   0x2   :  { %s15_s10 = sshll.u32 %s98_s9, 4  ;;  %s16_s10 = int_to_ptr.vmem [resolvable:$true] %s15_s10 }
   0x3   :  { %18 = dma.hbm_to_vmem [thread:$0]  %s14_s8, 256, %s16_s10, [#allocation3]  }
   0x4   :  { %94 = dma.done.wait [#allocation3], 256  }
   0x5   :  { %95 = vsyncadd [#allocation3], 4294967040  ;;  %s99_s11 = smov [#allocation5]   ;;  %s34_s15 = sshll.u32 %s117_s1, 4  ;;  %v23_v0 = vld [vmem:[#allocation2] sm:$0xff]  ;;  %v24_v1 = vld [vmem:[#allocation2 + $0x8] sm:$0xff]  ;;  %s35_s15 = int_to_ptr.hbm [resolvable:$true] %s34_s15 }
   0x6   :  { %s32_s12 = sshll.u32 %s99_s11, 4  ;;  %25 = vst [vmem:[#allocation5] sm:$0xff] %v23_v0  ;;  %s33_s12 = int_to_ptr.vmem [resolvable:$true] %s32_s12 }
   0x7   :  { %26 = vst [vmem:[#allocation5 + $0x8] sm:$0xff] %v24_v1 }
   0x8   :  { %37 = dma.vmem_to_hbm [thread:$0]  %s33_s12, 256, %s35_s15, [#allocation4]  }
   0x9   :  { %96 = dma.done.wait [#allocation4], 256  }
   0xa   :  { %97 = vsyncadd [#allocation4], 4294967040 }
   0xb   :  { %42 = vsyncpa [#allocation3], 1 }
   0xc   :  { %43 = vsyncpa [#allocation4], 1 }

</bundles_post_ra>
